<compile_context>
chip_gen: v6e
topology: v6e:2x2x1
jax: 0.10.0
libtpu: 0.0.40
codegen_flags: <defaults>
</compile_context>

<pallas_src>
import functools

import jax
import jax.numpy as jnp
from jax.experimental import pallas as pl
from jax.experimental.pallas import tpu as pltpu

# ---- module hyper-parameters (mirror the PyTorch module) -------------------
NUM_EMB_ROWS = 3        # nn.Embedding(num_nodes=3, embedding_dim)
EMBEDDING_DIM = 4096    # hard-coded in conv1 = GCNConv(input_dim + 4096, hidden)
HIDDEN_DIM = 32
OUTPUT_DIM = 5
LORA_R = 8


def _round_up(v, m):
    return ((v + m - 1) // m) * m


# ---- Pallas kernel: whole forward hot path ---------------------------------
def gcn_kernel(x_ref, a_ref, embw_ref, p_ref, out_ref, *, in_pad):
    """Fused GCN forward on pre-folded (LoRA-merged) weights.

    x_ref:    [N, in_pad]          raw node features, lane-padded to a multiple of 8
    a_ref:    [N, N]               normalized adjacency (with self loops)
    embw_ref: [N, HIDDEN]          embedding rows already contracted with fused W1 slice
    p_ref:    [in_pad + 16 + HIDDEN, HIDDEN] packed fused params (8-row aligned segments)
    out_ref:  [N, HIDDEN]          lane-dense log_softmax block (cols >= OUTPUT sliced in glue)
    """
    x = x_ref[...]
    a_hat = a_ref[...]
    emb_c = embw_ref[...]
    p = p_ref[...]

    r_b1 = in_pad
    r_w2 = in_pad + 8
    r_b2 = in_pad + 8 + HIDDEN_DIM

    w1x = p[0:in_pad, :]               # [in_pad, H]   (rows >= input_dim are 0)
    b1 = p[r_b1:r_b1 + 1, :]           # [1, H]
    w2 = p[r_w2:r_w2 + HIDDEN_DIM, :]  # [H, H]        (cols >= OUTPUT are 0)
    b2 = p[r_b2:r_b2 + 1, :]           # [1, H]        (cols >= OUTPUT are 0)

    # conv1 + fused LoRA1: A_hat @ (E[idx]@W1' + x@W1x') + b1'
    h = emb_c + jnp.dot(x, w1x, preferred_element_type=jnp.float32)
    h = jnp.dot(a_hat, h, preferred_element_type=jnp.float32) + b1
    h = jnp.maximum(h, 0.0)                                            # relu

    # conv2 + fused LoRA2 (lane-padded to HIDDEN; padded columns are exactly 0)
    g = jnp.dot(h, w2, preferred_element_type=jnp.float32)
    g = jnp.dot(a_hat, g, preferred_element_type=jnp.float32) + b2

    # masked log_softmax over the first OUTPUT_DIM columns; write lane-dense.
    col = jax.lax.broadcasted_iota(jnp.int32, g.shape, 1)
    valid = col < OUTPUT_DIM
    m = jnp.max(jnp.where(valid, g, -jnp.inf), axis=1, keepdims=True)
    z = g - m
    e = jnp.exp(jnp.where(valid, z, -jnp.inf))
    lse = jnp.log(jnp.sum(e, axis=1, keepdims=True))
    out_ref[...] = z - lse


# ---- one-time setup (hoisted out of the per-forward jit, cache the results) -
def build_a_hat(edge_index, n):
    """Dense GCNConv normalization: add self-loops, D^-1/2 (A+I) D^-1/2."""
    row, col = edge_index[0], edge_index[1]
    loop = jnp.arange(n, dtype=edge_index.dtype)
    row = jnp.concatenate([row, loop])
    col = jnp.concatenate([col, loop])
    deg = jnp.zeros((n,), jnp.float32).at[col].add(1.0)
    dinv = jnp.where(deg > 0, jax.lax.rsqrt(deg), 0.0)
    norm = dinv[row] * dinv[col]
    a_hat = jnp.zeros((n, n), jnp.float32).at[col, row].add(norm)
    return a_hat


def fuse_params(p, input_dim):
    """Fold LoRA into the conv weights, pre-contract the embedding table, and
    pack the remaining tiny params into one sublane-aligned VMEM array."""
    scale = 1.0 / LORA_R
    w1_eff = (p["w1"] @ p["la1"] @ p["lb1"]) * scale     # [4096+in, HIDDEN]
    b1_eff = (p["b1"] @ p["la1"] @ p["lb1"]) * scale     # [1, HIDDEN]
    w2_eff = (p["w2"] @ p["la2"] @ p["lb2"]) * scale     # [HIDDEN, OUTPUT]
    b2_eff = (p["b2"] @ p["la2"] @ p["lb2"]) * scale     # [1, OUTPUT]

    emb_w1 = p["embedding"] @ w1_eff[:EMBEDDING_DIM]     # [3, HIDDEN]
    w1x_eff = w1_eff[EMBEDDING_DIM:]                     # [input_dim, HIDDEN]

    in_pad = _round_up(input_dim, 8)
    rows = in_pad + 16 + HIDDEN_DIM                      # every segment 8-row aligned
    packed = jnp.zeros((rows, HIDDEN_DIM), jnp.float32)
    packed = packed.at[:input_dim, :].set(w1x_eff)
    packed = packed.at[in_pad, :].set(b1_eff[0])
    packed = packed.at[in_pad + 8:in_pad + 8 + HIDDEN_DIM, :OUTPUT_DIM].set(w2_eff)
    packed = packed.at[in_pad + 8 + HIDDEN_DIM, :OUTPUT_DIM].set(b2_eff[0])
    return emb_w1, packed


# ---- per-forward jit: gather + pad + single pallas_call ---------------------
@jax.jit
def gcn_forward(x, a_hat, emb_w1, packed, domain_idx):
    n, input_dim = x.shape
    in_pad = _round_up(input_dim, 8)

    x32 = x.astype(jnp.float32)
    if in_pad != input_dim:
        x32 = jnp.pad(x32, ((0, 0), (0, in_pad - input_dim)))
    emb_contrib = emb_w1[domain_idx]                     # 3-row gather, [N, HIDDEN]

    cost = pl.CostEstimate(
        flops=2 * n * HIDDEN_DIM * (in_pad + 2 * n + HIDDEN_DIM) + 8 * n * HIDDEN_DIM,
        transcendentals=n * (HIDDEN_DIM + 1),
        bytes_accessed=4 * (n * in_pad + n * n + 2 * n * HIDDEN_DIM
                            + (in_pad + 16 + HIDDEN_DIM) * HIDDEN_DIM),
    )

    kernel = functools.partial(gcn_kernel, in_pad=in_pad)
    vmem = pl.BlockSpec(memory_space=pltpu.MemorySpace.VMEM)
    out_full = pl.pallas_call(
        kernel,
        out_shape=jax.ShapeDtypeStruct((n, HIDDEN_DIM), jnp.float32),
        in_specs=[vmem] * 4,
        out_specs=vmem,
        cost_estimate=cost,
    )(x32, a_hat, emb_contrib, packed)
    return out_full[:, :OUTPUT_DIM]                      # fuses into XLA for free


# ---- pure-JAX reference mirroring the PyTorch forward exactly ---------------
def gcn_reference(x, edge_index, domain_idx, p):
    n = x.shape[0]
    a_hat = build_a_hat(edge_index, n)
    emb = p["embedding"][domain_idx].reshape(n, -1)
    feat = jnp.concatenate([emb, x.astype(jnp.float32)], axis=1)
    h = a_hat @ (feat @ p["w1"]) + p["b1"]
    h = (h @ p["la1"] @ p["lb1"]) * (1.0 / LORA_R)
    h = jnp.maximum(h, 0.0)
    g = a_hat @ (h @ p["w2"]) + p["b2"]
    g = (g @ p["la2"] @ p["lb2"]) * (1.0 / LORA_R)
    return jax.nn.log_softmax(g, axis=1)


def init_params(key, input_dim):
    """Deterministic synthetic weights (shapes from the module's __init__)."""
    f_in = input_dim + EMBEDDING_DIM
    ks = jax.random.split(key, 8)

    def u(k, shape, fan_in):
        s = 1.0 / (fan_in ** 0.5)
        return jax.random.uniform(k, shape, jnp.float32, -s, s)

    return dict(
        # nn.Embedding(3, 4096) weight (stands in for incontext64.npy)
        embedding=0.02 * jax.random.normal(ks[0], (NUM_EMB_ROWS, EMBEDDING_DIM),
                                           jnp.float32),
        # GCNConv(input_dim + 4096, hidden): weight [in, out] + bias [out]
        w1=u(ks[1], (f_in, HIDDEN_DIM), f_in),
        b1=jnp.zeros((1, HIDDEN_DIM), jnp.float32),
        # LoRALinear(hidden, hidden, r=8): stored pre-transposed [in, r], [r, out]
        la1=u(ks[2], (HIDDEN_DIM, LORA_R), HIDDEN_DIM),
        lb1=u(ks[3], (LORA_R, HIDDEN_DIM), LORA_R),
        # GCNConv(hidden, output)
        w2=u(ks[4], (HIDDEN_DIM, OUTPUT_DIM), HIDDEN_DIM),
        b2=jnp.zeros((1, OUTPUT_DIM), jnp.float32),
        # LoRALinear(output, output, r=8)
        la2=u(ks[5], (OUTPUT_DIM, LORA_R), OUTPUT_DIM),
        lb2=u(ks[6], (LORA_R, OUTPUT_DIM), LORA_R),
    )


if __name__ == "__main__":
    key = jax.random.PRNGKey(0)
    k_x, k_p = jax.random.split(key)

    N = 8            # number of graph nodes
    INPUT_DIM = 16   # per-node raw feature dim (x.shape[1])

    x = jax.random.normal(k_x, (N, INPUT_DIM), jnp.float32)
    # small directed edge list [2, E]  (row = source, col = target)
    edge_index = jnp.array(
        [[0, 1, 2, 3, 4, 5, 6, 7, 0, 2, 4, 6],
         [1, 2, 3, 4, 5, 6, 7, 0, 4, 6, 0, 2]], dtype=jnp.int32)
    domain_idx = jnp.array([0, 1, 2, 0, 1, 2, 0, 1], dtype=jnp.int32)

    params = init_params(k_p, INPUT_DIM)

    # One-time setup: fold LoRA + embedding into the weights and build A_hat.
    # These are cached and reused across forward calls (not recomputed per call).
    a_hat = build_a_hat(edge_index, N)
    emb_w1, packed = fuse_params(params, INPUT_DIM)
    a_hat, emb_w1, packed = jax.block_until_ready((a_hat, emb_w1, packed))

    out = gcn_forward(x, a_hat, emb_w1, packed, domain_idx)
    jax.block_until_ready(out)

    ref = gcn_reference(x, edge_index, domain_idx, params)
    assert out.shape == (N, OUTPUT_DIM)
    assert jnp.allclose(out, ref, atol=1e-4, rtol=1e-4), "kernel/reference mismatch"
    print("KERNEL_OK")
</pallas_src>

<mosaic_0001>
module attributes {stable_mosaic.version = 11 : i64} {
  func.func @gcn_kernel(%arg0: memref<8x16xf32, #tpu.memory_space<vmem>>, %arg1: memref<8x8xf32, #tpu.memory_space<vmem>>, %arg2: memref<8x32xf32, #tpu.memory_space<vmem>>, %arg3: memref<64x32xf32, #tpu.memory_space<vmem>>, %arg4: memref<8x32xf32, #tpu.memory_space<vmem>>) attributes {dimension_semantics = [], scalar_prefetch = 0 : i64, scratch_operands = 0 : i64, tpu.core_type = #tpu.core_type<tc>} {
    %c0 = arith.constant 0 : index
    %c0_0 = arith.constant 0 : index
    %0 = vector.load %arg0[%c0, %c0_0] : memref<8x16xf32, #tpu.memory_space<vmem>>, vector<8x16xf32>
    %c0_1 = arith.constant 0 : index
    %c0_2 = arith.constant 0 : index
    %1 = vector.load %arg1[%c0_1, %c0_2] : memref<8x8xf32, #tpu.memory_space<vmem>>, vector<8x8xf32>
    %c0_3 = arith.constant 0 : index
    %c0_4 = arith.constant 0 : index
    %2 = vector.load %arg2[%c0_3, %c0_4] : memref<8x32xf32, #tpu.memory_space<vmem>>, vector<8x32xf32>
    %c0_5 = arith.constant 0 : index
    %c0_6 = arith.constant 0 : index
    %3 = vector.load %arg3[%c0_5, %c0_6] : memref<64x32xf32, #tpu.memory_space<vmem>>, vector<64x32xf32>
    %4 = vector.extract_strided_slice %3 {offsets = [0, 0], sizes = [16, 32], strides = [1, 1]} : vector<64x32xf32> to vector<16x32xf32>
    %5 = vector.extract_strided_slice %3 {offsets = [16, 0], sizes = [1, 32], strides = [1, 1]} : vector<64x32xf32> to vector<1x32xf32>
    %6 = vector.extract_strided_slice %3 {offsets = [24, 0], sizes = [32, 32], strides = [1, 1]} : vector<64x32xf32> to vector<32x32xf32>
    %7 = vector.extract_strided_slice %3 {offsets = [56, 0], sizes = [1, 32], strides = [1, 1]} : vector<64x32xf32> to vector<1x32xf32>
    %cst = arith.constant dense<0.000000e+00> : vector<8x32xf32>
    %8 = tpu.matmul %0, %4, %cst {dimension_numbers = #tpu.dot_dimension_numbers<[1], [0], [0], [1], [0, 0, 1, 1], [], []>} : vector<8x16xf32>, vector<16x32xf32>, vector<8x32xf32> -> vector<8x32xf32>
    %9 = arith.addf %2, %8 : vector<8x32xf32>
    %cst_7 = arith.constant dense<0.000000e+00> : vector<8x32xf32>
    %10 = tpu.matmul %1, %9, %cst_7 {dimension_numbers = #tpu.dot_dimension_numbers<[1], [0], [0], [1], [0, 0, 1, 1], [], []>} : vector<8x8xf32>, vector<8x32xf32>, vector<8x32xf32> -> vector<8x32xf32>
    %11 = vector.broadcast %5 : vector<1x32xf32> to vector<8x32xf32>
    %12 = arith.addf %10, %11 : vector<8x32xf32>
    %cst_8 = arith.constant 0.000000e+00 : f32
    %13 = vector.broadcast %cst_8 : f32 to vector<8x32xf32>
    %14 = arith.maximumf %12, %13 : vector<8x32xf32>
    %cst_9 = arith.constant dense<0.000000e+00> : vector<8x32xf32>
    %15 = tpu.matmul %14, %6, %cst_9 {dimension_numbers = #tpu.dot_dimension_numbers<[1], [0], [0], [1], [0, 0, 1, 1], [], []>} : vector<8x32xf32>, vector<32x32xf32>, vector<8x32xf32> -> vector<8x32xf32>
    %cst_10 = arith.constant dense<0.000000e+00> : vector<8x32xf32>
    %16 = tpu.matmul %1, %15, %cst_10 {dimension_numbers = #tpu.dot_dimension_numbers<[1], [0], [0], [1], [0, 0, 1, 1], [], []>} : vector<8x8xf32>, vector<8x32xf32>, vector<8x32xf32> -> vector<8x32xf32>
    %17 = vector.broadcast %7 : vector<1x32xf32> to vector<8x32xf32>
    %18 = arith.addf %16, %17 : vector<8x32xf32>
    %19 = tpu.iota {dimensions = array<i32: 1>} : vector<8x32xi32>
    %c5_i32 = arith.constant 5 : i32
    %20 = vector.broadcast %c5_i32 : i32 to vector<8x32xi32>
    %21 = arith.cmpi slt, %19, %20 : vector<8x32xi32>
    %cst_11 = arith.constant 0xFF800000 : f32
    %22 = vector.broadcast %cst_11 : f32 to vector<8x32xf32>
    %23 = arith.select %21, %18, %22 : vector<8x32xi1>, vector<8x32xf32>
    %cst_12 = arith.constant dense<0xFF800000> : vector<8xf32>
    %24 = vector.multi_reduction <maximumf>, %23, %cst_12 [1] : vector<8x32xf32> to vector<8xf32>
    %25 = vector.shape_cast %24 : vector<8xf32> to vector<8x1xf32>
    %26 = vector.broadcast %25 : vector<8x1xf32> to vector<8x32xf32>
    %27 = arith.subf %18, %26 : vector<8x32xf32>
    %cst_13 = arith.constant 0xFF800000 : f32
    %28 = vector.broadcast %cst_13 : f32 to vector<8x32xf32>
    %29 = arith.select %21, %27, %28 : vector<8x32xi1>, vector<8x32xf32>
    %30 = math.exp %29 : vector<8x32xf32>
    %cst_14 = arith.constant dense<0.000000e+00> : vector<8xf32>
    %31 = vector.multi_reduction <add>, %30, %cst_14 [1] : vector<8x32xf32> to vector<8xf32>
    %32 = vector.shape_cast %31 : vector<8xf32> to vector<8x1xf32>
    %33 = math.log %32 : vector<8x1xf32>
    %34 = vector.broadcast %33 : vector<8x1xf32> to vector<8x32xf32>
    %35 = arith.subf %27, %34 : vector<8x32xf32>
    %c0_15 = arith.constant 0 : index
    %c0_16 = arith.constant 0 : index
    %36 = vector.load %arg4[%c0_15, %c0_16] : memref<8x32xf32, #tpu.memory_space<vmem>>, vector<8x32xf32>
    tpu.vector_store %arg4[%c0_15, %c0_16], %35 {strides = array<i32>} : memref<8x32xf32, #tpu.memory_space<vmem>>, vector<8x32xf32>,
    return
  }
}

</mosaic_0001>

<bundles_post_ra>
// kernel: gcn_forward.1
= control target key start
LH: loop header
LB: loop body
LE: loop exit
PB: predicated region body
PF: predicated region fallthrough
CT: control target
= control target key end

     0   :  { %v436_v1 = vmov 0.0   ;;  %vm437_vm0 = vmmov 0   ;;  %s510_s0 = inlined_call_operand.vmem [shape: f32[8,16], index: 0, kind: input, shape index: {}]   ;;  %s511_s1 = inlined_call_operand.vmem [shape: f32[8,8], index: 1, kind: input, shape index: {}]   ;;  %s512_s2 = inlined_call_operand.vmem [shape: f32[8,32], index: 2, kind: input, shape index: {}]   ;;  %s513_s3 = inlined_call_operand.vmem [shape: f32[64,32], index: 3, kind: input, shape index: {}]   ;;  %s514_s4 = inlined_call_operand.hbm [shape: f32[8,32], index: 4, kind: output, shape index: {}]  }
   0x1   :  { %v22_v0 = vld [vmem:[%s513_s3 + $0x8] sm:$0xff]  ;;  %379 = vmatprep.subr.mxu0 %v436_v1  ;;  %v21_v2 = vld [vmem:[%s513_s3] sm:$0xff]  ;;  %383 = vmatprep.mubr.msk.f32.mxu0 %vm437_vm0, %v436_v1 }
   0x2   :  { %9 = vsyncpa [#allocation3], 0  ;;  %380 = vmatpush3.msra.mxu0 %v22_v0  ;;  %v18_v3 = vld [vmem:[%s510_s0] sm:$0xff]  ;;  %vm29_vm1 = vcmask 130048   ;;  %386 = vmatprep.subr.mxu1 %v436_v1  ;;  %vm108_vm2 = vcmask 64512   ;;  %v27_v9 = vld [vmem:[%s513_s3 + $0x30] sm:$0xff]  ;;  %v104_v13 = vlaneseq }
   0x3   :  { %381 = vmatprep.subr.mxu0 %v436_v1  ;;  %388 = vmatprep.mubr.msk.f32.mxu1 %vm437_vm0, %v436_v1  ;;  %v20_v4 = vld [vmem:[%s512_s2] sm:$0xff]  ;;  %v26_v10 = vld [vmem:[%s513_s3 + $0x28] sm:$0xff]  ;;  %v24_v12 = vld [vmem:[%s513_s3 + $0x18] sm:$0xff]  ;;  %vm183_vm3 = vcmask 261120  }
   0x4   :  { %382 = vmatpush3.msra.mxu0 %v21_v2  ;;  %v19_v7 = vld [vmem:[%s511_s1] sm:$0xff]  ;;  %v105_v14 = vshrl.u32 %v104_v13, 7  ;;  %v23_v16 = vld [vmem:[%s513_s3 + $0x10] sm:$0xff]  ;;  %v28_v24 = vld [vmem:[%s513_s3 + $0x38] sm:$0xff]  ;;  %v332_v25 = vand.u32 127, %v104_v13 }
   0x5   :  { %384 = vmatmul.mubr.msk.f32.vlgmr.msra.gmra.mxu0 %vm29_vm1, %v18_v3  ;;  %402 = vmatprep.subr.mxu0 %v436_v1  ;;  %v25_v11 = vld [vmem:[%s513_s3 + $0x20] sm:$0xff]  ;;  %s438_s3 = smov [#allocation2]  }
   0x6   :  { %404 = vmatprep.mubr.msk.f32.mxu0 %vm437_vm0, %v436_v1  ;;  %v106_v15 = vsub.s32 0, %v105_v14  ;;  %vm333_vm4 = vcmp.lt.s32.totalorder %v332_v25, 5  ;;  %s355_s8 = sshll.u32 %s438_s3, 4  ;;  %s356_s8 = int_to_ptr.vmem [resolvable:$true] %s355_s8 }
   0x7   :  { %s414_s9 = scalar_lea.vmem %s356_s8, 128  ;;  %p419_p1 = scmp.lt.s32.totalorder %s356_s8, %s356_s8 }
   0x8   :  { %v107_v17 = vrot.slane %v23_v16, %v106_v15  ;;  %v260_v26 = vrot.slane %v28_v24, %v106_v15  ;;  %p415_p0 = scmp.ne.s32.totalorder %s356_s8, %s414_s9  ;;  %p420_p2 = scmp.lt.s32.totalorder %s414_s9, %s414_s9 }
   0xa   :  { %p421_p3 = por %p420_p2, %p419_p1 }
   0xc   :  { %p422_p4 = pnand %p421_p3, %p415_p0 }
  0xc5   :  { %v99_v5 = vpop.f32.mrf.mxu0 }
  0xc6   :  { %v103_v6 = vadd.f32 %v99_v5, %v20_v4 }
  0xc7   :  { %v385_v8 = vpop.f32.mrf.mxu0 }
  0xc8   :  { %387 = vmatpush3.msra.mxu1 %v103_v6 }
  0xc9   :  { %389 = vmatmul.mubr.msk.f32.vlgmr.msra.gmra.mxu1 %vm108_vm2, %v19_v7  ;;  %391 = vmatprep.subr.mxu1 %v436_v1 }
  0xca   :  { %392 = vmatpush3.msra.mxu1 %v27_v9  ;;  %399 = vmatprep.mubr.msk.f32.mxu1 %vm437_vm0, %v436_v1 }
  0xcb   :  { %393 = vmatprep.subr.mxu1 %v436_v1 }
  0xcc   :  { %394 = vmatpush3.msra.mxu1 %v26_v10 }
  0xcd   :  { %395 = vmatprep.subr.mxu1 %v436_v1 }
  0xce   :  { %396 = vmatpush3.msra.mxu1 %v25_v11 }
  0xcf   :  { %397 = vmatprep.subr.mxu1 %v436_v1 }
  0xd0   :  { %398 = vmatpush3.msra.mxu1 %v24_v12 }
 0x189   :  { %v178_v18 = vpop.f32.mrf.mxu1 }
 0x18a   :  { %v179_v19 = vadd.f32 %v178_v18, %v107_v17 }
 0x18b   :  { %v390_v20 = vpop.f32.mrf.mxu1 }
 0x18c   :  { %v182_v21 = vmax.f32 %v179_v19, 0.0 }
 0x18e   :  { %400 = vmatmul.mubr.msk.f32.vlgmr.msra.gmra.mxu1 %vm183_vm3, %v182_v21 }
 0x24e   :  { %v253_v22 = vpop.f32.mrf.mxu1 }
 0x24f   :  { %403 = vmatpush3.msra.mxu0 %v253_v22 }
 0x250   :  { %v401_v23 = vpop.f32.mrf.mxu1  ;;  %405 = vmatmul.mubr.msk.f32.vlgmr.msra.gmra.mxu0 %vm108_vm2, %v19_v7 }
 0x310   :  { %v327_v27 = vpop.f32.mrf.mxu0 }
 0x311   :  { %v328_v28 = vadd.f32 %v327_v27, %v260_v26 }
 0x312   :  { %v406_v29 = vpop.f32.mrf.mxu0 }
 0x313   :  { %v334_v30 = vsel %vm333_vm4, %v328_v28, -inf }
 0x314   :  { %v335_v31 = vsel %vm183_vm3, %v334_v30, -inf }
 0x315   :  { %336 = vmax.xlane.f32.xlu0 %v335_v31 }
 0x39e   :  { %v337_v32 = vpop.xlane.xlu0 %336 }
 0x39f   :  { %v338_v33 = vsub.f32 %v328_v28, %v337_v32 }
 0x3a1   :  { %v339_v34 = vsel %vm333_vm4, %v338_v33, -inf }
 0x3a2   :  { %v340_v35 = vmul.f32 1.442695, %v339_v34 }
 0x3a4   :  { %410 = vpow2.f32 %v340_v35 }
 0x3b1   :  { %v411_v36 = vpop.eup %410 }
 0x3b2   :  { %v342_v37 = vsel %vm183_vm3, %v411_v36, 0.0 }
 0x3b3   :  { %343 = vadd.xlane.f32.xlu0 %v342_v37 }
 0x43c   :  { %v344_v38 = vpop.xlane.xlu0 %343 }
 0x43d   :  { %412 = vlog2.f32 %v344_v38 }
 0x44a   :  { %v413_v39 = vpop.eup %412 }
 0x44b   :  { %v346_v40 = vmul.f32 0.6931472, %v413_v39 }
 0x44d   :  { %v347_v41 = vsub.f32 %v338_v33, %v346_v40 }
 0x44f   :  { %348 = vst.msk [vmem:[#allocation2] sm:$0xff] %vm183_vm3, %v347_v41 }
 0x450   :  { %425 = shalt.err (!%p422_p4)
}
 0x451   :  { %358 = dma.vmem_to_hbm [thread:$0]  %s356_s8, 128, %s514_s4, [#allocation3]  }
 0x452   :  { %434 = dma.done.wait [#allocation3], 128  }
 0x453   :  { %435 = vsyncadd [#allocation3], 4294967168 }
 0x454   :  { %362 = vsyncpa [#allocation3], 1 }

</bundles_post_ra>
